<compile_context>
chip_gen: v7x
topology: tpu7x:2x2x1
jax: 0.10.0
libtpu: 0.0.40
codegen_flags: <defaults>
</compile_context>

<pallas_src>
import jax
import jax.numpy as jnp
from jax.experimental import pallas as pl
from jax.experimental.pallas import tpu as pltpu

HIDDEN1 = 64
HIDDEN2 = 128


def _round_up(n: int, m: int) -> int:
    return ((n + m - 1) // m) * m


def encoder_kernel(xT_ref, w1_ref, b1_ref, w2_ref, b2_ref, w3_ref, b3_ref, oT_ref):
    # Shapes (batch in the lane dim everywhere):
    #   xT: (F_in, TB)            w1: (64, F_in)    b1: (64, 1)
    #   h1: (64, TB)              w2: (128, 64)     b2: (128, 1)
    #   h2: (128, TB)             w3: (F_out, 128)  b3: (F_out, 1)
    #   oT: (F_out, TB)
    xT = xT_ref[...]

    # Layer 1: MXU matmul (f32 accumulation) + f32 bias/ReLU epilogue on the VPU.
    h1 = jnp.dot(w1_ref[...], xT, preferred_element_type=jnp.float32)
    h1 = jnp.maximum(h1 + b1_ref[...], 0.0)

    # Layer 2 (re-cast to the MXU operand dtype; no-op when running pure f32).
    h2 = jnp.dot(w2_ref[...], h1.astype(w2_ref.dtype),
                 preferred_element_type=jnp.float32)
    h2 = jnp.maximum(h2 + b2_ref[...], 0.0)

    # Layer 3.
    y = jnp.dot(w3_ref[...], h2.astype(w3_ref.dtype),
                preferred_element_type=jnp.float32)
    oT_ref[...] = jnp.maximum(y + b3_ref[...], 0.0).astype(oT_ref.dtype)


def encoder_forward(x, params, *, tile_b=2048, mxu_dtype=None):
    """x: (B, in_features) float32 -> (B, out_features) float32.

    mxu_dtype=None keeps full-f32 operands (parity with the f32 PyTorch module);
    mxu_dtype=jnp.bfloat16 feeds the MXU in bf16 (f32 accumulation, f32
    bias/ReLU epilogue) for higher throughput on v6e / v7x.
    """
    w1, b1 = params["w1"], params["b1"]
    w2, b2 = params["w2"], params["b2"]
    w3, b3 = params["w3"], params["b3"]

    B, f_in = x.shape
    f_out = w3.shape[0]

    # Batch goes to the lane dim: the kernel sees (F_in, B) in / (F_out, B) out.
    xT = jnp.transpose(x)
    if mxu_dtype is not None:
        xT = xT.astype(mxu_dtype)
        w1 = w1.astype(mxu_dtype)
        w2 = w2.astype(mxu_dtype)
        w3 = w3.astype(mxu_dtype)

    # Batch tile (lane dim) must be a multiple of 128 or the full batch.
    if B > tile_b:
        tb = _round_up(tile_b, 128)
    elif B >= 256:
        # >= 2 grid steps so ("parallel",) can shard across v7x's 2 TensorCores.
        tb = _round_up(pl.cdiv(B, 2), 128)
    else:
        tb = B  # single small tile; lane dim == full array dim is always legal
    grid = (pl.cdiv(B, tb),)
    # NOTE: when B % tb != 0 the final tile is padded; padded lanes flow through
    # the matmuls and are simply not written back (correct by design).

    xT_spec = pl.BlockSpec((f_in, tb), lambda i: (0, i))
    oT_spec = pl.BlockSpec((f_out, tb), lambda i: (0, i))
    # Weights / biases: constant index_map -> DMA'd once, VMEM-resident.
    resident = lambda arr: pl.BlockSpec(arr.shape, lambda i: (0, 0))

    flops = 2 * B * (f_in * HIDDEN1 + HIDDEN1 * HIDDEN2 + HIDDEN2 * f_out)
    param_bytes = sum(int(a.size) * a.dtype.itemsize
                      for a in (w1, b1, w2, b2, w3, b3))
    bytes_accessed = (int(xT.size) * xT.dtype.itemsize
                      + B * f_out * 4 + param_bytes)

    outT = pl.pallas_call(
        encoder_kernel,
        out_shape=jax.ShapeDtypeStruct((f_out, B), jnp.float32),
        grid_spec=pltpu.PrefetchScalarGridSpec(
            num_scalar_prefetch=0,
            grid=grid,
            in_specs=[xT_spec,
                      resident(w1), resident(b1),
                      resident(w2), resident(b2),
                      resident(w3), resident(b3)],
            out_specs=oT_spec,
        ),
        compiler_params=pltpu.CompilerParams(
            # Batch tiles are independent -> shard across TensorCores on v7x.
            dimension_semantics=("parallel",),
        ),
        cost_estimate=pl.CostEstimate(
            flops=flops, transcendentals=0, bytes_accessed=bytes_accessed),
    )(xT, w1, b1, w2, b2, w3, b3)

    return jnp.transpose(outT)  # back to batch-major (B, F_out)


def init_params(key, in_features, out_features):
    """PyTorch-default init (uniform +/- 1/sqrt(fan_in)).
    Weights kept in the native PyTorch (out, in) layout; biases stored as
    (out, 1) columns so they broadcast along the lane (batch) dim in-kernel."""
    k = jax.random.split(key, 6)
    s1 = 1.0 / jnp.sqrt(in_features)
    s2 = 1.0 / jnp.sqrt(HIDDEN1)
    s3 = 1.0 / jnp.sqrt(HIDDEN2)
    return {
        "w1": jax.random.uniform(k[0], (HIDDEN1, in_features), jnp.float32, -s1, s1),
        "b1": jax.random.uniform(k[1], (HIDDEN1, 1), jnp.float32, -s1, s1),
        "w2": jax.random.uniform(k[2], (HIDDEN2, HIDDEN1), jnp.float32, -s2, s2),
        "b2": jax.random.uniform(k[3], (HIDDEN2, 1), jnp.float32, -s2, s2),
        "w3": jax.random.uniform(k[4], (out_features, HIDDEN2), jnp.float32, -s3, s3),
        "b3": jax.random.uniform(k[5], (out_features, 1), jnp.float32, -s3, s3),
    }


def _reference(x, params):
    # Pure-JAX reference of the PyTorch forward (x @ W.T + b per layer).
    h = jnp.maximum(x @ params["w1"].T + params["b1"].T, 0.0)
    h = jnp.maximum(h @ params["w2"].T + params["b2"].T, 0.0)
    return jnp.maximum(h @ params["w3"].T + params["b3"].T, 0.0)


if __name__ == "__main__":
    key = jax.random.PRNGKey(0)
    k_params, k_x1, k_x2 = jax.random.split(key, 3)

    in_features = 32
    out_features = 16
    params = init_params(k_params, in_features, out_features)

    # --- small batch: single-tile path (tb == B) ---
    x_small = jax.random.normal(k_x1, (8, in_features), dtype=jnp.float32)
    out_small = jax.block_until_ready(encoder_forward(x_small, params))
    ref_small = _reference(x_small, params)
    assert out_small.shape == (8, out_features)
    assert jnp.allclose(out_small, ref_small, atol=1e-4, rtol=1e-4)

    # --- larger batch: multi-step grid (tb=256, 2 steps -> megacore on v7x) ---
    x_big = jax.random.normal(k_x2, (512, in_features), dtype=jnp.float32)
    out_big = jax.block_until_ready(encoder_forward(x_big, params))
    ref_big = _reference(x_big, params)
    assert out_big.shape == (512, out_features)
    assert jnp.allclose(out_big, ref_big, atol=1e-4, rtol=1e-4)

    # --- bf16-MXU variant (v6e/v7x throughput path), f32 accumulation ---
    out_bf16 = jax.block_until_ready(
        encoder_forward(x_big, params, mxu_dtype=jnp.bfloat16))
    assert out_bf16.shape == (512, out_features)
    assert jnp.allclose(out_bf16, ref_big, atol=5e-2, rtol=5e-2)

    print("KERNEL_OK")
</pallas_src>

<mosaic_0001>
module attributes {stable_mosaic.version = 11 : i64} {
  func.func @encoder_kernel(%arg0: i32, %arg1: memref<32x8xf32, #tpu.memory_space<vmem>>, %arg2: memref<64x32xf32, #tpu.memory_space<vmem>>, %arg3: memref<64x1xf32, #tpu.memory_space<vmem>>, %arg4: memref<128x64xf32, #tpu.memory_space<vmem>>, %arg5: memref<128x1xf32, #tpu.memory_space<vmem>>, %arg6: memref<16x128xf32, #tpu.memory_space<vmem>>, %arg7: memref<16x1xf32, #tpu.memory_space<vmem>>, %arg8: memref<16x8xf32, #tpu.memory_space<vmem>>) attributes {dimension_semantics = [#tpu.dimension_semantics<parallel>], iteration_bounds = array<i64: 1>, scalar_prefetch = 0 : i64, scratch_operands = 0 : i64, tpu.core_type = #tpu.core_type<tc>, window_params = [{transform_indices = @transform_0, window_bounds = array<i64: 32, 8>}, {pipeline_mode = #tpu.pipeline_mode<synchronous>, transform_indices = @transform_1, window_bounds = array<i64: 64, 32>}, {pipeline_mode = #tpu.pipeline_mode<synchronous>, transform_indices = @transform_2, window_bounds = array<i64: 64, 1>}, {pipeline_mode = #tpu.pipeline_mode<synchronous>, transform_indices = @transform_3, window_bounds = array<i64: 128, 64>}, {pipeline_mode = #tpu.pipeline_mode<synchronous>, transform_indices = @transform_4, window_bounds = array<i64: 128, 1>}, {pipeline_mode = #tpu.pipeline_mode<synchronous>, transform_indices = @transform_5, window_bounds = array<i64: 16, 128>}, {pipeline_mode = #tpu.pipeline_mode<synchronous>, transform_indices = @transform_6, window_bounds = array<i64: 16, 1>}, {transform_indices = @transform_7, window_bounds = array<i64: 16, 8>}]} {
    %c0 = arith.constant 0 : index
    %c0_0 = arith.constant 0 : index
    %0 = vector.load %arg1[%c0, %c0_0] : memref<32x8xf32, #tpu.memory_space<vmem>>, vector<32x8xf32>
    %c0_1 = arith.constant 0 : index
    %c0_2 = arith.constant 0 : index
    %1 = vector.load %arg2[%c0_1, %c0_2] : memref<64x32xf32, #tpu.memory_space<vmem>>, vector<64x32xf32>
    %cst = arith.constant dense<0.000000e+00> : vector<64x8xf32>
    %2 = tpu.matmul %1, %0, %cst {dimension_numbers = #tpu.dot_dimension_numbers<[1], [0], [0], [1], [0, 0, 1, 1], [], []>} : vector<64x32xf32>, vector<32x8xf32>, vector<64x8xf32> -> vector<64x8xf32>
    %c0_3 = arith.constant 0 : index
    %c0_4 = arith.constant 0 : index
    %3 = vector.load %arg3[%c0_3, %c0_4] : memref<64x1xf32, #tpu.memory_space<vmem>>, vector<64x1xf32>
    %4 = vector.broadcast %3 : vector<64x1xf32> to vector<64x8xf32>
    %5 = arith.addf %2, %4 : vector<64x8xf32>
    %cst_5 = arith.constant 0.000000e+00 : f32
    %6 = vector.broadcast %cst_5 : f32 to vector<64x8xf32>
    %7 = arith.maximumf %5, %6 : vector<64x8xf32>
    %c0_6 = arith.constant 0 : index
    %c0_7 = arith.constant 0 : index
    %8 = vector.load %arg4[%c0_6, %c0_7] : memref<128x64xf32, #tpu.memory_space<vmem>>, vector<128x64xf32>
    %cst_8 = arith.constant dense<0.000000e+00> : vector<128x8xf32>
    %9 = tpu.matmul %8, %7, %cst_8 {dimension_numbers = #tpu.dot_dimension_numbers<[1], [0], [0], [1], [0, 0, 1, 1], [], []>} : vector<128x64xf32>, vector<64x8xf32>, vector<128x8xf32> -> vector<128x8xf32>
    %c0_9 = arith.constant 0 : index
    %c0_10 = arith.constant 0 : index
    %10 = vector.load %arg5[%c0_9, %c0_10] : memref<128x1xf32, #tpu.memory_space<vmem>>, vector<128x1xf32>
    %11 = vector.broadcast %10 : vector<128x1xf32> to vector<128x8xf32>
    %12 = arith.addf %9, %11 : vector<128x8xf32>
    %cst_11 = arith.constant 0.000000e+00 : f32
    %13 = vector.broadcast %cst_11 : f32 to vector<128x8xf32>
    %14 = arith.maximumf %12, %13 : vector<128x8xf32>
    %c0_12 = arith.constant 0 : index
    %c0_13 = arith.constant 0 : index
    %15 = vector.load %arg6[%c0_12, %c0_13] : memref<16x128xf32, #tpu.memory_space<vmem>>, vector<16x128xf32>
    %cst_14 = arith.constant dense<0.000000e+00> : vector<16x8xf32>
    %16 = tpu.matmul %15, %14, %cst_14 {dimension_numbers = #tpu.dot_dimension_numbers<[1], [0], [0], [1], [0, 0, 1, 1], [], []>} : vector<16x128xf32>, vector<128x8xf32>, vector<16x8xf32> -> vector<16x8xf32>
    %c0_15 = arith.constant 0 : index
    %c0_16 = arith.constant 0 : index
    %17 = vector.load %arg7[%c0_15, %c0_16] : memref<16x1xf32, #tpu.memory_space<vmem>>, vector<16x1xf32>
    %18 = vector.broadcast %17 : vector<16x1xf32> to vector<16x8xf32>
    %19 = arith.addf %16, %18 : vector<16x8xf32>
    %cst_17 = arith.constant 0.000000e+00 : f32
    %20 = vector.broadcast %cst_17 : f32 to vector<16x8xf32>
    %21 = arith.maximumf %19, %20 : vector<16x8xf32>
    %c0_18 = arith.constant 0 : index
    %c0_19 = arith.constant 0 : index
    %22 = vector.load %arg8[%c0_18, %c0_19] : memref<16x8xf32, #tpu.memory_space<vmem>>, vector<16x8xf32>
    tpu.vector_store %arg8[%c0_18, %c0_19], %21 {strides = array<i32>} : memref<16x8xf32, #tpu.memory_space<vmem>>, vector<16x8xf32>,
    return
  }
  func.func @transform_0(%arg0: i32) -> (i32, i32) {
    %c0_i32 = arith.constant 0 : i32
    %c0_i32_0 = arith.constant 0 : i32
    return %c0_i32, %arg0 : i32, i32
  }
  func.func @transform_1(%arg0: i32) -> (i32, i32) {
    %c0_i32 = arith.constant 0 : i32
    %c0_i32_0 = arith.constant 0 : i32
    %c0_i32_1 = arith.constant 0 : i32
    return %c0_i32, %c0_i32_0 : i32, i32
  }
  func.func @transform_2(%arg0: i32) -> (i32, i32) {
    %c0_i32 = arith.constant 0 : i32
    %c0_i32_0 = arith.constant 0 : i32
    %c0_i32_1 = arith.constant 0 : i32
    return %c0_i32, %c0_i32_0 : i32, i32
  }
  func.func @transform_3(%arg0: i32) -> (i32, i32) {
    %c0_i32 = arith.constant 0 : i32
    %c0_i32_0 = arith.constant 0 : i32
    %c0_i32_1 = arith.constant 0 : i32
    return %c0_i32, %c0_i32_0 : i32, i32
  }
  func.func @transform_4(%arg0: i32) -> (i32, i32) {
    %c0_i32 = arith.constant 0 : i32
    %c0_i32_0 = arith.constant 0 : i32
    %c0_i32_1 = arith.constant 0 : i32
    return %c0_i32, %c0_i32_0 : i32, i32
  }
  func.func @transform_5(%arg0: i32) -> (i32, i32) {
    %c0_i32 = arith.constant 0 : i32
    %c0_i32_0 = arith.constant 0 : i32
    %c0_i32_1 = arith.constant 0 : i32
    return %c0_i32, %c0_i32_0 : i32, i32
  }
  func.func @transform_6(%arg0: i32) -> (i32, i32) {
    %c0_i32 = arith.constant 0 : i32
    %c0_i32_0 = arith.constant 0 : i32
    %c0_i32_1 = arith.constant 0 : i32
    return %c0_i32, %c0_i32_0 : i32, i32
  }
  func.func @transform_7(%arg0: i32) -> (i32, i32) {
    %c0_i32 = arith.constant 0 : i32
    %c0_i32_0 = arith.constant 0 : i32
    return %c0_i32, %arg0 : i32, i32
  }
}

</mosaic_0001>

<bundles_post_ra>
// kernel: tpu_custom_call.1
= control target key start
LH: loop header
LB: loop body
LE: loop exit
PB: predicated region body
PF: predicated region fallthrough
CT: control target
= control target key end

     0   :  { %vm86_vm0 = vcmask 261120   ;;  %v876_v3 = vmov 0   ;;  %vm336_vm1 = vcmask 523264   ;;  %vm637_vm2 = vcmask 64512   ;;  %s1115_s0 = inlined_call_operand.vmem [shape: f32[32,8], index: 0, kind: input, shape index: {}]   ;;  %s1116_s1 = inlined_call_operand.vmem [shape: f32[64,32], index: 1, kind: input, shape index: {}]   ;;  %s1117_s2 = inlined_call_operand.vmem [shape: f32[64,1], index: 2, kind: input, shape index: {}]   ;;  %s1118_s4 = inlined_call_operand.vmem [shape: f32[128,1], index: 4, kind: input, shape index: {}]   ;;  %s1119_s6 = inlined_call_operand.vmem [shape: f32[16,1], index: 6, kind: input, shape index: {}]   ;;  %s1120_s3 = inlined_call_operand.vmem [shape: f32[128,64], index: 3, kind: input, shape index: {}]   ;;  %s1121_s5 = inlined_call_operand.vmem [shape: f32[16,128], index: 5, kind: input, shape index: {}]   ;;  %s1122_s7 = inlined_call_operand.vmem [shape: f32[16,8], index: 7, kind: output, shape index: {}]  }
   0x1   :  { %v26_v0 = vld [vmem:[%s1115_s0] sm:$0xff]  ;;  %v27_v1 = vld [vmem:[%s1115_s0 + $0x8] sm:$0xff]  ;;  %v28_v2 = vld [vmem:[%s1115_s0 + $0x10] sm:$0xff]  ;;  %874 = vset.pattern.permute.xlu0 %v876_v3  ;;  %875 = vset.pattern.permute.xlu1 %v876_v3 }
   0x2   :  { %v817_v4 = vpack.c.bf16 %v27_v1, %v26_v0  ;;  %v29_v5 = vld [vmem:[%s1115_s0 + $0x18] sm:$0xff]  ;;  %v30_v6 = vld [vmem:[%s1116_s1] sm:$0xff]  ;;  %v40_v9 = vld [vmem:[%s1117_s2 + $0x10] sm:$0xff] }
   0x3   :  { %v821_v7 = vpack.c.bf16 %v29_v5, %v28_v2  ;;  %730 = vmatprep.mubr.msk.f32.mxu0 %vm86_vm0, %v30_v6  ;;  %v38_v8 = vld [vmem:[%s1117_s2] sm:$0xff]  ;;  %58 = vperm.xlu1 %875, %v40_v9   ;;  %v39_v10 = vld [vmem:[%s1117_s2 + $0x8] sm:$0xff]  ;;  %v41_v11 = vld [vmem:[%s1117_s2 + $0x18] sm:$0xff] }
   0x4   :  { %818 = vmatprep.subr.bf16.mxu0 %v817_v4  ;;  %48 = vperm.xlu0 %874, %v38_v8   ;;  %v31_v12 = vld [vmem:[%s1116_s1 + $0x8] sm:$0xff]  ;;  %v32_v13 = vld [vmem:[%s1116_s1 + $0x10] sm:$0xff]  ;;  %v42_v14 = vld [vmem:[%s1117_s2 + $0x20] sm:$0xff] }
   0x5   :  { %820 = vmatpush3.bf16.msra.mxu0 %v817_v4  ;;  %v43_v15 = vld [vmem:[%s1117_s2 + $0x28] sm:$0xff]  ;;  %v33_v16 = vld [vmem:[%s1116_s1 + $0x18] sm:$0xff]  ;;  %v34_v17 = vld [vmem:[%s1116_s1 + $0x20] sm:$0xff] }
   0x6   :  { %822 = vmatprep.subr.bf16.mxu0 %v821_v7  ;;  %v44_v18 = vld [vmem:[%s1117_s2 + $0x30] sm:$0xff]  ;;  %v45_v19 = vld [vmem:[%s1117_s2 + $0x38] sm:$0xff]  ;;  %v35_v20 = vld [vmem:[%s1116_s1 + $0x28] sm:$0xff] }
   0x7   :  { %63 = vperm.xlu1 %875, %v41_v11   ;;  %v36_v21 = vld [vmem:[%s1116_s1 + $0x30] sm:$0xff]  ;;  %v240_v22 = vld [vmem:[%s1118_s4] sm:$0xff]  ;;  %v241_v23 = vld [vmem:[%s1118_s4 + $0x8] sm:$0xff] }
   0x8   :  { %53 = vperm.xlu0 %874, %v39_v10   ;;  %v37_v24 = vld [vmem:[%s1116_s1 + $0x38] sm:$0xff]  ;;  %v242_v25 = vld [vmem:[%s1118_s4 + $0x10] sm:$0xff]  ;;  %v244_v27 = vld [vmem:[%s1118_s4 + $0x20] sm:$0xff] }
   0x9   :  { %824 = vmatpush3.bf16.msra.mxu0 %v821_v7  ;;  %v243_v26 = vld [vmem:[%s1118_s4 + $0x18] sm:$0xff]  ;;  %v245_v28 = vld [vmem:[%s1118_s4 + $0x28] sm:$0xff]  ;;  %v246_v29 = vld [vmem:[%s1118_s4 + $0x30] sm:$0xff] }
   0xa   :  { %v247_v30 = vld [vmem:[%s1118_s4 + $0x38] sm:$0xff]  ;;  %v248_v31 = vld [vmem:[%s1118_s4 + $0x40] sm:$0xff]  ;;  %v249_v32 = vld [vmem:[%s1118_s4 + $0x48] sm:$0xff] }
   0xb   :  { %73 = vperm.xlu1 %875, %v43_v15   ;;  %v250_v33 = vld [vmem:[%s1118_s4 + $0x50] sm:$0xff]  ;;  %v251_v34 = vld [vmem:[%s1118_s4 + $0x58] sm:$0xff]  ;;  %v252_v35 = vld [vmem:[%s1118_s4 + $0x60] sm:$0xff] }
   0xc   :  { %731 = vmatmul.mubr.msk.f32.vlgmr.msra.gmra.mrb[0].mxu0 %vm86_vm0, %v31_v12  ;;  %68 = vperm.xlu0 %874, %v42_v14   ;;  %v253_v36 = vld [vmem:[%s1118_s4 + $0x68] sm:$0xff]  ;;  %v254_v37 = vld [vmem:[%s1118_s4 + $0x70] sm:$0xff]  ;;  %v255_v38 = vld [vmem:[%s1118_s4 + $0x78] sm:$0xff] }
   0xd   :  { %733 = vmatprep.mubr.msk.f32.mxu0 %vm86_vm0, %v32_v13  ;;  %v548_v39 = vld [vmem:[%s1119_s6] sm:$0xff]  ;;  %v549_v40 = vld [vmem:[%s1119_s6 + $0x8] sm:$0xff]  ;;  %v226_v15 = vld [vmem:[%s1120_s3 + $0x10] sm:$0xff] }
   0xe   :  { %v224_v41 = vld [vmem:[%s1120_s3] sm:$0xff]  ;;  %v225_v14 = vld [vmem:[%s1120_s3 + $0x8] sm:$0xff] }
   0xf   :  { %83 = vperm.xlu1 %875, %v45_v19   ;;  %758 = vmatprep.mubr.msk.f32.mxu1 %vm336_vm1, %v224_v41  ;;  %v230_v19 = vld [vmem:[%s1120_s3 + $0x30] sm:$0xff] }
  0x10   :  { %734 = vmatmul.mubr.msk.f32.gmra.mrb[2].mxu0 %vm86_vm0, %v33_v16  ;;  %78 = vperm.xlu0 %874, %v44_v18   ;;  %v227_v16 = vld [vmem:[%s1120_s3 + $0x18] sm:$0xff]  ;;  %v229_v18 = vld [vmem:[%s1120_s3 + $0x28] sm:$0xff] }
  0x11   :  { %736 = vmatprep.mubr.msk.f32.mxu0 %vm86_vm0, %v34_v17  ;;  %v228_v17 = vld [vmem:[%s1120_s3 + $0x20] sm:$0xff] }
  0x13   :  { %263 = vperm.xlu1 %875, %v241_v23   ;;  %v234_v23 = vld [vmem:[%s1120_s3 + $0x50] sm:$0xff] }
  0x14   :  { %737 = vmatmul.mubr.msk.f32.gmra.mrb[4].mxu0 %vm86_vm0, %v35_v20  ;;  %258 = vperm.xlu0 %874, %v240_v22   ;;  %v231_v20 = vld [vmem:[%s1120_s3 + $0x38] sm:$0xff]  ;;  %v233_v22 = vld [vmem:[%s1120_s3 + $0x48] sm:$0xff] }
  0x15   :  { %739 = vmatprep.mubr.msk.f32.mxu0 %vm86_vm0, %v36_v21  ;;  %v232_v21 = vld [vmem:[%s1120_s3 + $0x40] sm:$0xff] }
  0x17   :  { %273 = vperm.xlu1 %875, %v243_v26   ;;  %v237_v26 = vld [vmem:[%s1120_s3 + $0x68] sm:$0xff] }
  0x18   :  { %740 = vmatmul.mubr.msk.f32.gmra.mrb[6].mxu0 %vm86_vm0, %v37_v24  ;;  %268 = vperm.xlu0 %874, %v242_v25   ;;  %v235_v24 = vld [vmem:[%s1120_s3 + $0x58] sm:$0xff]  ;;  %v236_v25 = vld [vmem:[%s1120_s3 + $0x60] sm:$0xff] }
  0x1b   :  { %283 = vperm.xlu1 %875, %v245_v28   ;;  %v239_v28 = vld [vmem:[%s1120_s3 + $0x78] sm:$0xff] }
  0x1c   :  { %278 = vperm.xlu0 %874, %v244_v27   ;;  %v238_v27 = vld [vmem:[%s1120_s3 + $0x70] sm:$0xff] }
  0x1f   :  { %293 = vperm.xlu1 %875, %v247_v30  }
  0x20   :  { %288 = vperm.xlu0 %874, %v246_v29   ;;  %v546_v29 = vld [vmem:[%s1121_s5] sm:$0xff] }
  0x21   :  { %814 = vmatprep.mubr.f32.mxu0 %v546_v29 }
  0x23   :  { %303 = vperm.xlu1 %875, %v249_v32  }
  0x24   :  { %298 = vperm.xlu0 %874, %v248_v31  }
  0x27   :  { %313 = vperm.xlu1 %875, %v251_v34  }
  0x28   :  { %308 = vperm.xlu0 %874, %v250_v33  }
  0x2b   :  { %323 = vperm.xlu1 %875, %v253_v36  }
  0x2c   :  { %318 = vperm.xlu0 %874, %v252_v35  }
  0x2f   :  { %333 = vperm.xlu1 %875, %v255_v38  }
  0x30   :  { %328 = vperm.xlu0 %874, %v254_v37  }
  0x33   :  { %557 = vperm.xlu1 %875, %v549_v40  }
  0x34   :  { %552 = vperm.xlu0 %874, %v548_v39  }
  0x82   :  { %v59_v43 = vpop.permute.xlu1 %58 }
  0x83   :  { %v49_v42 = vpop.permute.xlu0 %48 }
  0x86   :  { %v64_v45 = vpop.permute.xlu1 %63 }
  0x87   :  { %v54_v44 = vpop.permute.xlu0 %53 }
  0x8a   :  { %v74_v55 = vpop.permute.xlu1 %73 }
  0x8b   :  { %v69_v58 = vpop.permute.xlu0 %68 }
  0x8e   :  { %v84_v3 = vpop.permute.xlu1 %83 }
  0x8f   :  { %v79_v6 = vpop.permute.xlu0 %78 }
  0x92   :  { %v264_v30 = vpop.permute.xlu1 %263 }
  0x93   :  { %v259_v31 = vpop.permute.xlu0 %258 }
  0x96   :  { %v274_v32 = vpop.permute.xlu1 %273 }
  0x97   :  { %v269_v33 = vpop.permute.xlu0 %268 }
  0x9a   :  { %v284_v34 = vpop.permute.xlu1 %283 }
  0x9b   :  { %v279_v35 = vpop.permute.xlu0 %278 }
  0x9e   :  { %v294_v41 = vpop.permute.xlu1 %293 }
  0xdf   :  { %v732_v46 = vpop.f32.mrb[0].mxu0 }
  0xe0   :  { %v183_v47 = vadd.f32 %v732_v46, %v54_v44  ;;  %v177_v48 = vpop.f32.mrb[1].mxu0  ;;  %v289_v44 = vpop.permute.xlu0 %288 }
  0xe1   :  { %v178_v49 = vadd.f32 %v177_v48, %v49_v42 }
  0xe2   :  { %v217_v50 = vmax.f32 %v183_v47, 0.0 }
  0xe3   :  { %v216_v51 = vmax.f32 %v178_v49, 0.0  ;;  %v735_v52 = vpop.f32.mrb[2].mxu0 }
  0xe4   :  { %v193_v53 = vadd.f32 %v735_v52, %v64_v45  ;;  %v187_v54 = vpop.f32.mrb[3].mxu0 }
  0xe5   :  { %v188_v56 = vadd.f32 %v187_v54, %v59_v43  ;;  %v825_v57 = vpack.c.bf16 %v217_v50, %v216_v51  ;;  %v304_v54 = vpop.permute.xlu1 %303 }
  0xe6   :  { %v219_v59 = vmax.f32 %v193_v53, 0.0 }
  0xe7   :  { %v218_v60 = vmax.f32 %v188_v56, 0.0  ;;  %v738_v61 = vpop.f32.mrb[4].mxu0  ;;  %826 = vmatprep.subr.bf16.mxu1 %v825_v57 }
  0xe8   :  { %v203_v62 = vadd.f32 %v738_v61, %v74_v55  ;;  %v197_v63 = vpop.f32.mrb[5].mxu0  ;;  %828 = vmatpush3.bf16.msra.mxu1 %v825_v57  ;;  %v299_v57 = vpop.permute.xlu0 %298 }
  0xe9   :  { %v829_v0 = vpack.c.bf16 %v219_v59, %v218_v60  ;;  %v198_v1 = vadd.f32 %v197_v63, %v69_v58 }
  0xea   :  { %v221_v2 = vmax.f32 %v203_v62, 0.0 }
  0xeb   :  { %v220_v4 = vmax.f32 %v198_v1, 0.0  ;;  %v741_v5 = vpop.f32.mrb[6].mxu0  ;;  %830 = vmatprep.subr.bf16.mxu1 %v829_v0 }
  0xec   :  { %v213_v7 = vadd.f32 %v741_v5, %v84_v3  ;;  %v207_v8 = vpop.f32.mrb[7].mxu0  ;;  %832 = vmatpush3.bf16.msra.mxu1 %v829_v0  ;;  %v309_v5 = vpop.permute.xlu0 %308 }
  0xed   :  { %v833_v9 = vpack.c.bf16 %v221_v2, %v220_v4  ;;  %v208_v10 = vadd.f32 %v207_v8, %v79_v6  ;;  %v314_v2 = vpop.permute.xlu1 %313 }
  0xee   :  { %v223_v11 = vmax.f32 %v213_v7, 0.0 }
  0xef   :  { %v222_v12 = vmax.f32 %v208_v10, 0.0  ;;  %834 = vmatprep.subr.bf16.mxu1 %v833_v9 }
  0xf0   :  { %836 = vmatpush3.bf16.msra.mxu1 %v833_v9 }
  0xf1   :  { %v837_v13 = vpack.c.bf16 %v223_v11, %v222_v12 }
  0xf3   :  { %838 = vmatprep.subr.bf16.mxu1 %v837_v13 }
  0xf4   :  { %840 = vmatpush3.bf16.msra.mxu1 %v837_v13 }
  0xf7   :  { %759 = vmatmul.mubr.msk.f32.vlgmr.msra.gmra.mrb[0].mxu1 %vm336_vm1, %v225_v14 }
  0xf8   :  { %761 = vmatprep.mubr.msk.f32.mxu1 %vm336_vm1, %v226_v15  ;;  %v324_v15 = vpop.permute.xlu1 %323 }
  0xfb   :  { %762 = vmatmul.mubr.msk.f32.gmra.mrb[2].mxu1 %vm336_vm1, %v227_v16 }
  0xfc   :  { %764 = vmatprep.mubr.msk.f32.mxu1 %vm336_vm1, %v228_v17 }
  0xff   :  { %765 = vmatmul.mubr.msk.f32.gmra.mrb[4].mxu1 %vm336_vm1, %v229_v18  ;;  %v319_v18 = vpop.permute.xlu0 %318 }
 0x100   :  { %767 = vmatprep.mubr.msk.f32.mxu1 %vm336_vm1, %v230_v19 }
 0x103   :  { %768 = vmatmul.mubr.msk.f32.gmra.mrb[6].mxu1 %vm336_vm1, %v231_v20 }
 0x104   :  { %770 = vmatprep.mubr.msk.f32.mxu1 %vm336_vm1, %v232_v21 }
 0x107   :  { %771 = vmatmul.mubr.msk.f32.gmra.mrb[8].mxu1 %vm336_vm1, %v233_v22 }
 0x108   :  { %773 = vmatprep.mubr.msk.f32.mxu1 %vm336_vm1, %v234_v23 }
 0x10b   :  { %774 = vmatmul.mubr.msk.f32.gmra.mrb[10].mxu1 %vm336_vm1, %v235_v24 }
 0x10c   :  { %776 = vmatprep.mubr.msk.f32.mxu1 %vm336_vm1, %v236_v25 }
 0x10f   :  { %777 = vmatmul.mubr.msk.f32.gmra.mrb[12].mxu1 %vm336_vm1, %v237_v26 }
 0x110   :  { %779 = vmatprep.mubr.msk.f32.mxu1 %vm336_vm1, %v238_v27  ;;  %v334_v27 = vpop.permute.xlu1 %333 }
 0x113   :  { %780 = vmatmul.mubr.msk.f32.gmra.mrb[14].mxu1 %vm336_vm1, %v239_v28 }
 0x1ca   :  { %v760_v36 = vpop.f32.mrb[0].mxu1 }
 0x1cb   :  { %v457_v37 = vadd.f32 %v760_v36, %v264_v30  ;;  %v451_v38 = vpop.f32.mrb[1].mxu1  ;;  %v329_v30 = vpop.permute.xlu0 %328 }
 0x1cc   :  { %v452_v39 = vadd.f32 %v451_v38, %v259_v31  ;;  %v547_v38 = vld [vmem:[%s1121_s5 + $0x8] sm:$0xff] }
 0x1cd   :  { %v531_v40 = vmax.f32 %v457_v37, 0.0 }
 0x1ce   :  { %v530_v42 = vmax.f32 %v452_v39, 0.0  ;;  %v763_v43 = vpop.f32.mrb[2].mxu1  ;;  %v558_v39 = vpop.permute.xlu1 %557 }
 0x1cf   :  { %v467_v45 = vadd.f32 %v763_v43, %v274_v32  ;;  %v461_v46 = vpop.f32.mrb[3].mxu1 }
 0x1d0   :  { %v841_v47 = vpack.c.bf16 %v531_v40, %v530_v42  ;;  %v462_v48 = vadd.f32 %v461_v46, %v269_v33 }
 0x1d1   :  { %v533_v49 = vmax.f32 %v467_v45, 0.0 }
 0x1d2   :  { %v532_v50 = vmax.f32 %v462_v48, 0.0  ;;  %v766_v51 = vpop.f32.mrb[4].mxu1  ;;  %842 = vmatprep.subr.bf16.mxu0 %v841_v47 }
 0x1d3   :  { %v477_v52 = vadd.f32 %v766_v51, %v284_v34  ;;  %v471_v53 = vpop.f32.mrb[5].mxu1  ;;  %844 = vmatpush3.bf16.msra.mxu0 %v841_v47 }
 0x1d4   :  { %v845_v55 = vpack.c.bf16 %v533_v49, %v532_v50  ;;  %v472_v56 = vadd.f32 %v471_v53, %v279_v35 }
 0x1d5   :  { %v535_v58 = vmax.f32 %v477_v52, 0.0 }
 0x1d6   :  { %v534_v59 = vmax.f32 %v472_v56, 0.0  ;;  %v769_v60 = vpop.f32.mrb[6].mxu1  ;;  %846 = vmatprep.subr.bf16.mxu0 %v845_v55 }
 0x1d7   :  { %v487_v61 = vadd.f32 %v769_v60, %v294_v41  ;;  %v481_v62 = vpop.f32.mrb[7].mxu1  ;;  %848 = vmatpush3.bf16.msra.mxu0 %v845_v55  ;;  %v553_v41 = vpop.permute.xlu0 %552 }
 0x1d8   :  { %v849_v63 = vpack.c.bf16 %v535_v58, %v534_v59  ;;  %v482_v0 = vadd.f32 %v481_v62, %v289_v44 }
 0x1d9   :  { %v537_v1 = vmax.f32 %v487_v61, 0.0 }
 0x1da   :  { %v536_v3 = vmax.f32 %v482_v0, 0.0  ;;  %v772_v4 = vpop.f32.mrb[8].mxu1  ;;  %850 = vmatprep.subr.bf16.mxu0 %v849_v63 }
 0x1db   :  { %v497_v6 = vadd.f32 %v772_v4, %v304_v54  ;;  %v491_v7 = vpop.f32.mrb[9].mxu1  ;;  %852 = vmatpush3.bf16.msra.mxu0 %v849_v63 }
 0x1dc   :  { %v853_v8 = vpack.c.bf16 %v537_v1, %v536_v3  ;;  %v492_v9 = vadd.f32 %v491_v7, %v299_v57 }
 0x1dd   :  { %v539_v10 = vmax.f32 %v497_v6, 0.0 }
 0x1de   :  { %v538_v11 = vmax.f32 %v492_v9, 0.0  ;;  %v775_v12 = vpop.f32.mrb[10].mxu1  ;;  %854 = vmatprep.subr.bf16.mxu0 %v853_v8 }
 0x1df   :  { %v507_v13 = vadd.f32 %v775_v12, %v314_v2  ;;  %v501_v14 = vpop.f32.mrb[11].mxu1  ;;  %856 = vmatpush3.bf16.msra.mxu0 %v853_v8 }
 0x1e0   :  { %v857_v16 = vpack.c.bf16 %v539_v10, %v538_v11  ;;  %v502_v17 = vadd.f32 %v501_v14, %v309_v5 }
 0x1e1   :  { %v541_v19 = vmax.f32 %v507_v13, 0.0 }
 0x1e2   :  { %v540_v20 = vmax.f32 %v502_v17, 0.0  ;;  %v778_v21 = vpop.f32.mrb[12].mxu1  ;;  %858 = vmatprep.subr.bf16.mxu0 %v857_v16 }
 0x1e3   :  { %v517_v22 = vadd.f32 %v778_v21, %v324_v15  ;;  %v511_v23 = vpop.f32.mrb[13].mxu1  ;;  %860 = vmatpush3.bf16.msra.mxu0 %v857_v16 }
 0x1e4   :  { %v861_v24 = vpack.c.bf16 %v541_v19, %v540_v20  ;;  %v512_v25 = vadd.f32 %v511_v23, %v319_v18 }
 0x1e5   :  { %v543_v26 = vmax.f32 %v517_v22, 0.0 }
 0x1e6   :  { %v542_v28 = vmax.f32 %v512_v25, 0.0  ;;  %v781_v29 = vpop.f32.mrb[14].mxu1  ;;  %862 = vmatprep.subr.bf16.mxu0 %v861_v24 }
 0x1e7   :  { %v527_v31 = vadd.f32 %v781_v29, %v334_v27  ;;  %v521_v32 = vpop.f32.mrb[15].mxu1  ;;  %864 = vmatpush3.bf16.msra.mxu0 %v861_v24 }
 0x1e8   :  { %v865_v33 = vpack.c.bf16 %v543_v26, %v542_v28  ;;  %v522_v34 = vadd.f32 %v521_v32, %v329_v30 }
 0x1e9   :  { %v545_v35 = vmax.f32 %v527_v31, 0.0 }
 0x1ea   :  { %v544_v36 = vmax.f32 %v522_v34, 0.0  ;;  %866 = vmatprep.subr.bf16.mxu0 %v865_v33 }
 0x1eb   :  { %868 = vmatpush3.bf16.msra.mxu0 %v865_v33 }
 0x1ec   :  { %v869_v37 = vpack.c.bf16 %v545_v35, %v544_v36 }
 0x1ee   :  { %870 = vmatprep.subr.bf16.mxu0 %v869_v37 }
 0x1ef   :  { %872 = vmatpush3.bf16.msra.mxu0 %v869_v37 }
 0x1f2   :  { %815 = vmatmul.mubr.f32.vlgmr.msra.gmra.mrb[8].mxu0 %v547_v38 }
 0x2c5   :  { %v816_v40 = vpop.f32.mrb[8].mxu0 }
 0x2c6   :  { %v632_v42 = vadd.f32 %v816_v40, %v558_v39  ;;  %v626_v43 = vpop.f32.mrb[9].mxu0 }
 0x2c7   :  { %v627_v44 = vadd.f32 %v626_v43, %v553_v41 }
 0x2c8   :  { %v636_v45 = vmax.f32 %v632_v42, 0.0 }
 0x2c9   :  { %v635_v46 = vmax.f32 %v627_v44, 0.0 }
 0x2ca   :  { %639 = vst.msk [vmem:[%s1122_s7 + $0x8] sm:$0xff] %vm637_vm2, %v636_v45 }
 0x2cb   :  { %638 = vst.msk [vmem:[%s1122_s7] sm:$0xff] %vm637_vm2, %v635_v46 }

</bundles_post_ra>
